<compile_context>
chip_gen: v7x
topology: tpu7x:2x2x1
jax: 0.10.0
libtpu: 0.0.40
codegen_flags: <defaults>
</compile_context>

<pallas_src>
import functools

import jax
import jax.numpy as jnp
from jax.experimental import pallas as pl
from jax.experimental.pallas import tpu as pltpu

_LANE = 128
_SUBLANE = 8
_TARGET_STEP_BYTES = 4 * 1024 * 1024   # input payload per grid step (single-buffered)


def _round_up(x, m):
    return ((x + m - 1) // m) * m


def _cdiv(a, b):
    return -(-a // b)


def _quantile_loss_kernel(preds_ref, target_ref, out_ref, acc_ref, *,
                          q_vals, qm1_vals, t_sub, steps, s_valid):
    """grid = (chunk [parallel], batch-tile [arbitrary]).

    preds_ref : (Q, t_sub, 128)  input dtype  batch on (sublane-rows x lanes)
    target_ref: (1, t_sub, 128)  input dtype
    out_ref   : (1, 8, 128)      f32          per-chunk partial sums (lane-dense)
    acc_ref   : (Q, 8, 128)      f32 VMEM     narrow accumulator
    """
    c = pl.program_id(0)
    s = pl.program_id(1)
    n_groups = t_sub // _SUBLANE

    @pl.when(s == 0)
    def _init():
        acc_ref[...] = jnp.zeros_like(acc_ref)

    # Logical first sublane-row covered by this grid step (phantom steps land >= s_valid).
    block_start = (c * steps + s) * t_sub

    def _accumulate(mask):
        target = target_ref[0].astype(jnp.float32)                 # (t_sub, 128)
        for i, (q, qm1) in enumerate(zip(q_vals, qm1_vals)):       # Q is tiny: unroll
            e = target - preds_ref[i].astype(jnp.float32)          # (t_sub, 128)
            loss = jnp.maximum(qm1 * e, q * e)                     # scalar immediates
            if mask is not None:
                loss = jnp.where(mask, loss, 0.0)                  # kill OOB garbage rows
            # Fold t_sub rows into 8: layout-preserving split of the sublane axis + VALU adds.
            acc_ref[i] += jnp.sum(loss.reshape(n_groups, _SUBLANE, _LANE), axis=0)

    @pl.when(block_start + t_sub <= s_valid)        # fully in-bounds block (common case)
    def _interior():
        _accumulate(None)

    @pl.when(block_start + t_sub > s_valid)         # ragged tail or phantom (clamped) block
    def _tail():
        rows = jax.lax.broadcasted_iota(jnp.int32, (t_sub, 1), 0) + block_start
        _accumulate(rows < s_valid)

    @pl.when(s == pl.num_programs(1) - 1)
    def _finalize():
        out_ref[...] = jnp.sum(acc_ref[...], axis=0, keepdims=True)   # (1, 8, 128)


@functools.partial(jax.jit, static_argnames=("quantiles", "t_sub"))
def _quantile_loss_impl(preds, target, quantiles, t_sub):
    N, Q = preds.shape
    assert Q == len(quantiles)
    q_vals = tuple(float(q) for q in quantiles)
    qm1_vals = tuple(q - 1.0 for q in q_vals)

    # ---- layout: batch on (sublane-rows x 128 lanes); keep the input dtype.
    # TODO(synk): the transpose is itself an extra HBM pass; ideally the producer emits
    # (Q, N) directly or this loss is fused into the producing kernel.
    S = _cdiv(N, _LANE)                       # 128-lane rows that actually hold data
    SP = _round_up(max(S, 1), _SUBLANE)       # rows padded up to a sublane multiple
    NP = SP * _LANE
    preds_t = preds.T                         # (Q, N)
    target_r = target.reshape(1, N)           # (1, N)
    if NP != N:
        # tiny (<1024 elem) zero pad, loss-neutral, fuses with the transpose copy
        preds_t = jnp.pad(preds_t, ((0, 0), (0, NP - N)))
        target_r = jnp.pad(target_r, ((0, 0), (0, NP - N)))
    preds_3d = preds_t.reshape(Q, SP, _LANE)      # metadata-only reshape
    target_3d = target_r.reshape(1, SP, _LANE)

    # ---- tiling: ~4 MiB of input payload per step, rows a multiple of 8.
    if t_sub is None:
        bytes_per_row = (Q + 1) * _LANE * preds.dtype.itemsize
        t_sub = max(_SUBLANE,
                    (_TARGET_STEP_BYTES // bytes_per_row) // _SUBLANE * _SUBLANE)
    t_sub = min(int(t_sub), SP)
    assert t_sub % _SUBLANE == 0

    total_tiles = _cdiv(SP, t_sub)
    num_chunks = 2 if total_tiles >= 2 else 1     # megacore split on v7x; harmless on v5e/v6e
    steps = _cdiv(total_tiles, num_chunks)
    last_tile = total_tiles - 1

    # Clamp so a phantom step (odd tile count) re-reads an in-bounds tile; the kernel masks
    # its contribution to zero.  Never lets a block start past the array end.
    def _tile(c, s):
        return jnp.minimum(c * steps + s, last_tile)

    kernel = functools.partial(
        _quantile_loss_kernel, q_vals=q_vals, qm1_vals=qm1_vals,
        t_sub=t_sub, steps=steps, s_valid=SP)

    itemsize = preds.dtype.itemsize
    cost = pl.CostEstimate(
        flops=6 * N * Q,                   # sub, 2 muls, max, mask-select, reduce-add
        transcendentals=0,
        bytes_accessed=(Q + 1) * NP * itemsize + num_chunks * _SUBLANE * _LANE * 4)

    partials = pl.pallas_call(
        kernel,
        grid=(num_chunks, steps),
        in_specs=[
            pl.BlockSpec((Q, t_sub, _LANE), lambda c, s: (0, _tile(c, s), 0)),   # preds
            pl.BlockSpec((1, t_sub, _LANE), lambda c, s: (0, _tile(c, s), 0)),   # target
        ],
        out_specs=pl.BlockSpec((1, _SUBLANE, _LANE), lambda c, s: (c, 0, 0)),
        out_shape=jax.ShapeDtypeStruct((num_chunks, _SUBLANE, _LANE), jnp.float32),
        scratch_shapes=[pltpu.VMEM((Q, _SUBLANE, _LANE), jnp.float32)],
        compiler_params=pltpu.CompilerParams(
            dimension_semantics=("parallel", "arbitrary"),
            vmem_limit_bytes=32 * 1024 * 1024,
        ),
        cost_estimate=cost,
    )(preds_3d, target_3d)

    # Tiny cross-chunk reduce + mean over the TRUE batch size.
    return jnp.sum(partials) / jnp.float32(N)


def quantile_loss(preds, target, quantiles, t_sub=None):
    """preds: (N, Q), target: (N,), quantiles: sequence of Q floats -> scalar f32."""
    assert preds.shape[0] == target.shape[0]
    return _quantile_loss_impl(preds, target, tuple(float(q) for q in quantiles), t_sub)


def _reference(preds, target, quantiles):
    preds = preds.astype(jnp.float32)
    target = target.astype(jnp.float32)
    q = jnp.asarray(quantiles, jnp.float32)[None, :]      # (1, Q)
    errors = target[:, None] - preds                      # (N, Q)
    losses = jnp.maximum((q - 1.0) * errors, q * errors)
    return jnp.mean(jnp.sum(losses, axis=1))


if __name__ == "__main__":
    quantiles = [0.1, 0.5, 0.9]
    Q = len(quantiles)

    key = jax.random.PRNGKey(0)
    k1, k2, k3, k4, k5, k6 = jax.random.split(key, 6)

    # small shape consistent with the module: preds (N, Q), target (N,)
    N = 16
    preds = jax.random.normal(k1, (N, Q), dtype=jnp.float32)
    target = jax.random.normal(k2, (N,), dtype=jnp.float32)
    loss = jax.block_until_ready(quantile_loss(preds, target, quantiles))
    ref = _reference(preds, target, quantiles)
    assert jnp.allclose(loss, ref, rtol=1e-5, atol=1e-5), (loss, ref)

    # multi-chunk / ragged-sublane / phantom-tile path with a forced small tile
    N2 = 5000
    preds2 = jax.random.normal(k3, (N2, Q), dtype=jnp.float32)
    target2 = jax.random.normal(k4, (N2,), dtype=jnp.float32)
    loss2 = jax.block_until_ready(quantile_loss(preds2, target2, quantiles, t_sub=16))
    ref2 = _reference(preds2, target2, quantiles)
    assert jnp.allclose(loss2, ref2, rtol=1e-5, atol=1e-5), (loss2, ref2)

    # default tiling on a mid-size ragged batch
    N3 = 300
    preds3 = jax.random.normal(k5, (N3, Q), dtype=jnp.float32)
    target3 = jax.random.normal(k6, (N3,), dtype=jnp.float32)
    loss3 = jax.block_until_ready(quantile_loss(preds3, target3, quantiles))
    ref3 = _reference(preds3, target3, quantiles)
    assert jnp.allclose(loss3, ref3, rtol=1e-5, atol=1e-5), (loss3, ref3)

    print("KERNEL_OK")
</pallas_src>

<mosaic_0001>
module attributes {stable_mosaic.version = 11 : i64} {
  func.func @_quantile_loss_kernel(%arg0: i32, %arg1: i32, %arg2: memref<3x8x128xf32, #tpu.memory_space<vmem>>, %arg3: memref<1x8x128xf32, #tpu.memory_space<vmem>>, %arg4: memref<1x8x128xf32, #tpu.memory_space<vmem>>, %arg5: memref<3x8x128xf32, #tpu.memory_space<vmem>>) attributes {dimension_semantics = [#tpu.dimension_semantics<parallel>, #tpu.dimension_semantics<arbitrary>], iteration_bounds = array<i64: 1, 1>, scalar_prefetch = 0 : i64, scratch_operands = 1 : i64, tpu.core_type = #tpu.core_type<tc>, window_params = [{transform_indices = @transform_0, window_bounds = array<i64: 3, 8, 128>}, {transform_indices = @transform_1, window_bounds = array<i64: 1, 8, 128>}, {transform_indices = @transform_2, window_bounds = array<i64: 1, 8, 128>}]} {
    %c0_i32 = arith.constant 0 : i32
    %0 = arith.cmpi eq, %arg1, %c0_i32 : i32
    %1 = arith.extui %0 : i1 to i32
    %c0_i32_0 = arith.constant 0 : i32
    %2 = arith.cmpi ne, %1, %c0_i32_0 : i32
    scf.if %2 {
      %cst = arith.constant 0.000000e+00 : f32
      %17 = vector.broadcast %cst : f32 to vector<3x8x128xf32>
      %c0 = arith.constant 0 : index
      %c0_9 = arith.constant 0 : index
      %c0_10 = arith.constant 0 : index
      %18 = vector.load %arg5[%c0, %c0_9, %c0_10] : memref<3x8x128xf32, #tpu.memory_space<vmem>>, vector<3x8x128xf32>
      tpu.vector_store %arg5[%c0, %c0_9, %c0_10], %17 {strides = array<i32>} : memref<3x8x128xf32, #tpu.memory_space<vmem>>, vector<3x8x128xf32>,
    } else {
    }
    %c1_i32 = arith.constant 1 : i32
    %3 = arith.muli %arg0, %c1_i32 : i32
    %4 = arith.addi %3, %arg1 : i32
    %c8_i32 = arith.constant 8 : i32
    %5 = arith.muli %4, %c8_i32 : i32
    %c8_i32_1 = arith.constant 8 : i32
    %6 = arith.addi %5, %c8_i32_1 : i32
    %c8_i32_2 = arith.constant 8 : i32
    %7 = arith.cmpi sle, %6, %c8_i32_2 : i32
    %8 = arith.extui %7 : i1 to i32
    %c0_i32_3 = arith.constant 0 : i32
    %9 = arith.cmpi ne, %8, %c0_i32_3 : i32
    scf.if %9 {
      %c0 = arith.constant 0 : index
      %c0_9 = arith.constant 0 : index
      %c0_10 = arith.constant 0 : index
      %17 = vector.load %arg3[%c0, %c0_9, %c0_10] : memref<1x8x128xf32, #tpu.memory_space<vmem>>, vector<1x8x128xf32>
      %18 = vector.shape_cast %17 : vector<1x8x128xf32> to vector<8x128xf32>
      %c0_11 = arith.constant 0 : index
      %c0_12 = arith.constant 0 : index
      %c0_13 = arith.constant 0 : index
      %19 = vector.load %arg2[%c0_11, %c0_12, %c0_13] : memref<3x8x128xf32, #tpu.memory_space<vmem>>, vector<1x8x128xf32>
      %20 = vector.shape_cast %19 : vector<1x8x128xf32> to vector<8x128xf32>
      %21 = arith.subf %18, %20 : vector<8x128xf32>
      %cst = arith.constant -0.899999976 : f32
      %22 = vector.broadcast %cst : f32 to vector<8x128xf32>
      %23 = arith.mulf %22, %21 : vector<8x128xf32>
      %cst_14 = arith.constant 1.000000e-01 : f32
      %24 = vector.broadcast %cst_14 : f32 to vector<8x128xf32>
      %25 = arith.mulf %24, %21 : vector<8x128xf32>
      %26 = arith.maximumf %23, %25 : vector<8x128xf32>
      %c0_15 = arith.constant 0 : index
      %c0_16 = arith.constant 0 : index
      %c0_17 = arith.constant 0 : index
      %27 = vector.load %arg5[%c0_15, %c0_16, %c0_17] : memref<3x8x128xf32, #tpu.memory_space<vmem>>, vector<1x8x128xf32>
      %28 = vector.shape_cast %27 : vector<1x8x128xf32> to vector<8x128xf32>
      %29 = vector.shape_cast %26 : vector<8x128xf32> to vector<1x8x128xf32>
      %cst_18 = arith.constant dense<0.000000e+00> : vector<8x128xf32>
      %30 = vector.multi_reduction <add>, %29, %cst_18 [0] : vector<1x8x128xf32> to vector<8x128xf32>
      %31 = arith.addf %28, %30 : vector<8x128xf32>
      %c0_19 = arith.constant 0 : index
      %c0_20 = arith.constant 0 : index
      %c0_21 = arith.constant 0 : index
      %32 = vector.load %arg5[%c0_19, %c0_20, %c0_21] : memref<3x8x128xf32, #tpu.memory_space<vmem>>, vector<1x8x128xf32>
      %33 = vector.shape_cast %32 : vector<1x8x128xf32> to vector<8x128xf32>
      %34 = vector.shape_cast %31 : vector<8x128xf32> to vector<1x8x128xf32>
      tpu.vector_store %arg5[%c0_19, %c0_20, %c0_21], %34 {strides = array<i32>} : memref<3x8x128xf32, #tpu.memory_space<vmem>>, vector<1x8x128xf32>,
      %c1 = arith.constant 1 : index
      %c0_22 = arith.constant 0 : index
      %c0_23 = arith.constant 0 : index
      %35 = vector.load %arg2[%c1, %c0_22, %c0_23] : memref<3x8x128xf32, #tpu.memory_space<vmem>>, vector<1x8x128xf32>
      %36 = vector.shape_cast %35 : vector<1x8x128xf32> to vector<8x128xf32>
      %37 = arith.subf %18, %36 : vector<8x128xf32>
      %cst_24 = arith.constant -5.000000e-01 : f32
      %38 = vector.broadcast %cst_24 : f32 to vector<8x128xf32>
      %39 = arith.mulf %38, %37 : vector<8x128xf32>
      %cst_25 = arith.constant 5.000000e-01 : f32
      %40 = vector.broadcast %cst_25 : f32 to vector<8x128xf32>
      %41 = arith.mulf %40, %37 : vector<8x128xf32>
      %42 = arith.maximumf %39, %41 : vector<8x128xf32>
      %c1_26 = arith.constant 1 : index
      %c0_27 = arith.constant 0 : index
      %c0_28 = arith.constant 0 : index
      %43 = vector.load %arg5[%c1_26, %c0_27, %c0_28] : memref<3x8x128xf32, #tpu.memory_space<vmem>>, vector<1x8x128xf32>
      %44 = vector.shape_cast %43 : vector<1x8x128xf32> to vector<8x128xf32>
      %45 = vector.shape_cast %42 : vector<8x128xf32> to vector<1x8x128xf32>
      %cst_29 = arith.constant dense<0.000000e+00> : vector<8x128xf32>
      %46 = vector.multi_reduction <add>, %45, %cst_29 [0] : vector<1x8x128xf32> to vector<8x128xf32>
      %47 = arith.addf %44, %46 : vector<8x128xf32>
      %c1_30 = arith.constant 1 : index
      %c0_31 = arith.constant 0 : index
      %c0_32 = arith.constant 0 : index
      %48 = vector.load %arg5[%c1_30, %c0_31, %c0_32] : memref<3x8x128xf32, #tpu.memory_space<vmem>>, vector<1x8x128xf32>
      %49 = vector.shape_cast %48 : vector<1x8x128xf32> to vector<8x128xf32>
      %50 = vector.shape_cast %47 : vector<8x128xf32> to vector<1x8x128xf32>
      tpu.vector_store %arg5[%c1_30, %c0_31, %c0_32], %50 {strides = array<i32>} : memref<3x8x128xf32, #tpu.memory_space<vmem>>, vector<1x8x128xf32>,
      %c2 = arith.constant 2 : index
      %c0_33 = arith.constant 0 : index
      %c0_34 = arith.constant 0 : index
      %51 = vector.load %arg2[%c2, %c0_33, %c0_34] : memref<3x8x128xf32, #tpu.memory_space<vmem>>, vector<1x8x128xf32>
      %52 = vector.shape_cast %51 : vector<1x8x128xf32> to vector<8x128xf32>
      %53 = arith.subf %18, %52 : vector<8x128xf32>
      %cst_35 = arith.constant -1.000000e-01 : f32
      %54 = vector.broadcast %cst_35 : f32 to vector<8x128xf32>
      %55 = arith.mulf %54, %53 : vector<8x128xf32>
      %cst_36 = arith.constant 0.899999976 : f32
      %56 = vector.broadcast %cst_36 : f32 to vector<8x128xf32>
      %57 = arith.mulf %56, %53 : vector<8x128xf32>
      %58 = arith.maximumf %55, %57 : vector<8x128xf32>
      %c2_37 = arith.constant 2 : index
      %c0_38 = arith.constant 0 : index
      %c0_39 = arith.constant 0 : index
      %59 = vector.load %arg5[%c2_37, %c0_38, %c0_39] : memref<3x8x128xf32, #tpu.memory_space<vmem>>, vector<1x8x128xf32>
      %60 = vector.shape_cast %59 : vector<1x8x128xf32> to vector<8x128xf32>
      %61 = vector.shape_cast %58 : vector<8x128xf32> to vector<1x8x128xf32>
      %cst_40 = arith.constant dense<0.000000e+00> : vector<8x128xf32>
      %62 = vector.multi_reduction <add>, %61, %cst_40 [0] : vector<1x8x128xf32> to vector<8x128xf32>
      %63 = arith.addf %60, %62 : vector<8x128xf32>
      %c2_41 = arith.constant 2 : index
      %c0_42 = arith.constant 0 : index
      %c0_43 = arith.constant 0 : index
      %64 = vector.load %arg5[%c2_41, %c0_42, %c0_43] : memref<3x8x128xf32, #tpu.memory_space<vmem>>, vector<1x8x128xf32>
      %65 = vector.shape_cast %64 : vector<1x8x128xf32> to vector<8x128xf32>
      %66 = vector.shape_cast %63 : vector<8x128xf32> to vector<1x8x128xf32>
      tpu.vector_store %arg5[%c2_41, %c0_42, %c0_43], %66 {strides = array<i32>} : memref<3x8x128xf32, #tpu.memory_space<vmem>>, vector<1x8x128xf32>,
    } else {
    }
    %c8_i32_4 = arith.constant 8 : i32
    %10 = arith.addi %5, %c8_i32_4 : i32
    %c8_i32_5 = arith.constant 8 : i32
    %11 = arith.cmpi sgt, %10, %c8_i32_5 : i32
    %12 = arith.extui %11 : i1 to i32
    %c0_i32_6 = arith.constant 0 : i32
    %13 = arith.cmpi ne, %12, %c0_i32_6 : i32
    scf.if %13 {
      %17 = tpu.iota {dimensions = array<i32: 0>} : vector<8x1xi32>
      %18 = vector.broadcast %5 : i32 to vector<8x1xi32>
      %19 = arith.addi %17, %18 : vector<8x1xi32>
      %c8_i32_9 = arith.constant 8 : i32
      %20 = vector.broadcast %c8_i32_9 : i32 to vector<8x1xi32>
      %21 = arith.cmpi slt, %19, %20 : vector<8x1xi32>
      %c0 = arith.constant 0 : index
      %c0_10 = arith.constant 0 : index
      %c0_11 = arith.constant 0 : index
      %22 = vector.load %arg3[%c0, %c0_10, %c0_11] : memref<1x8x128xf32, #tpu.memory_space<vmem>>, vector<1x8x128xf32>
      %23 = vector.shape_cast %22 : vector<1x8x128xf32> to vector<8x128xf32>
      %c0_12 = arith.constant 0 : index
      %c0_13 = arith.constant 0 : index
      %c0_14 = arith.constant 0 : index
      %24 = vector.load %arg2[%c0_12, %c0_13, %c0_14] : memref<3x8x128xf32, #tpu.memory_space<vmem>>, vector<1x8x128xf32>
      %25 = vector.shape_cast %24 : vector<1x8x128xf32> to vector<8x128xf32>
      %26 = arith.subf %23, %25 : vector<8x128xf32>
      %cst = arith.constant -0.899999976 : f32
      %27 = vector.broadcast %cst : f32 to vector<8x128xf32>
      %28 = arith.mulf %27, %26 : vector<8x128xf32>
      %cst_15 = arith.constant 1.000000e-01 : f32
      %29 = vector.broadcast %cst_15 : f32 to vector<8x128xf32>
      %30 = arith.mulf %29, %26 : vector<8x128xf32>
      %31 = arith.maximumf %28, %30 : vector<8x128xf32>
      %cst_16 = arith.constant 0.000000e+00 : f32
      %32 = vector.shape_cast %21 : vector<8x1xi1> to vector<8x1xi1>
      %33 = vector.broadcast %32 : vector<8x1xi1> to vector<8x128xi1>
      %34 = vector.broadcast %cst_16 : f32 to vector<8x128xf32>
      %35 = arith.select %33, %31, %34 : vector<8x128xi1>, vector<8x128xf32>
      %c0_17 = arith.constant 0 : index
      %c0_18 = arith.constant 0 : index
      %c0_19 = arith.constant 0 : index
      %36 = vector.load %arg5[%c0_17, %c0_18, %c0_19] : memref<3x8x128xf32, #tpu.memory_space<vmem>>, vector<1x8x128xf32>
      %37 = vector.shape_cast %36 : vector<1x8x128xf32> to vector<8x128xf32>
      %38 = vector.shape_cast %35 : vector<8x128xf32> to vector<1x8x128xf32>
      %cst_20 = arith.constant dense<0.000000e+00> : vector<8x128xf32>
      %39 = vector.multi_reduction <add>, %38, %cst_20 [0] : vector<1x8x128xf32> to vector<8x128xf32>
      %40 = arith.addf %37, %39 : vector<8x128xf32>
      %c0_21 = arith.constant 0 : index
      %c0_22 = arith.constant 0 : index
      %c0_23 = arith.constant 0 : index
      %41 = vector.load %arg5[%c0_21, %c0_22, %c0_23] : memref<3x8x128xf32, #tpu.memory_space<vmem>>, vector<1x8x128xf32>
      %42 = vector.shape_cast %41 : vector<1x8x128xf32> to vector<8x128xf32>
      %43 = vector.shape_cast %40 : vector<8x128xf32> to vector<1x8x128xf32>
      tpu.vector_store %arg5[%c0_21, %c0_22, %c0_23], %43 {strides = array<i32>} : memref<3x8x128xf32, #tpu.memory_space<vmem>>, vector<1x8x128xf32>,
      %c1 = arith.constant 1 : index
      %c0_24 = arith.constant 0 : index
      %c0_25 = arith.constant 0 : index
      %44 = vector.load %arg2[%c1, %c0_24, %c0_25] : memref<3x8x128xf32, #tpu.memory_space<vmem>>, vector<1x8x128xf32>
      %45 = vector.shape_cast %44 : vector<1x8x128xf32> to vector<8x128xf32>
      %46 = arith.subf %23, %45 : vector<8x128xf32>
      %cst_26 = arith.constant -5.000000e-01 : f32
      %47 = vector.broadcast %cst_26 : f32 to vector<8x128xf32>
      %48 = arith.mulf %47, %46 : vector<8x128xf32>
      %cst_27 = arith.constant 5.000000e-01 : f32
      %49 = vector.broadcast %cst_27 : f32 to vector<8x128xf32>
      %50 = arith.mulf %49, %46 : vector<8x128xf32>
      %51 = arith.maximumf %48, %50 : vector<8x128xf32>
      %cst_28 = arith.constant 0.000000e+00 : f32
      %52 = vector.shape_cast %21 : vector<8x1xi1> to vector<8x1xi1>
      %53 = vector.broadcast %52 : vector<8x1xi1> to vector<8x128xi1>
      %54 = vector.broadcast %cst_28 : f32 to vector<8x128xf32>
      %55 = arith.select %53, %51, %54 : vector<8x128xi1>, vector<8x128xf32>
      %c1_29 = arith.constant 1 : index
      %c0_30 = arith.constant 0 : index
      %c0_31 = arith.constant 0 : index
      %56 = vector.load %arg5[%c1_29, %c0_30, %c0_31] : memref<3x8x128xf32, #tpu.memory_space<vmem>>, vector<1x8x128xf32>
      %57 = vector.shape_cast %56 : vector<1x8x128xf32> to vector<8x128xf32>
      %58 = vector.shape_cast %55 : vector<8x128xf32> to vector<1x8x128xf32>
      %cst_32 = arith.constant dense<0.000000e+00> : vector<8x128xf32>
      %59 = vector.multi_reduction <add>, %58, %cst_32 [0] : vector<1x8x128xf32> to vector<8x128xf32>
      %60 = arith.addf %57, %59 : vector<8x128xf32>
      %c1_33 = arith.constant 1 : index
      %c0_34 = arith.constant 0 : index
      %c0_35 = arith.constant 0 : index
      %61 = vector.load %arg5[%c1_33, %c0_34, %c0_35] : memref<3x8x128xf32, #tpu.memory_space<vmem>>, vector<1x8x128xf32>
      %62 = vector.shape_cast %61 : vector<1x8x128xf32> to vector<8x128xf32>
      %63 = vector.shape_cast %60 : vector<8x128xf32> to vector<1x8x128xf32>
      tpu.vector_store %arg5[%c1_33, %c0_34, %c0_35], %63 {strides = array<i32>} : memref<3x8x128xf32, #tpu.memory_space<vmem>>, vector<1x8x128xf32>,
      %c2 = arith.constant 2 : index
      %c0_36 = arith.constant 0 : index
      %c0_37 = arith.constant 0 : index
      %64 = vector.load %arg2[%c2, %c0_36, %c0_37] : memref<3x8x128xf32, #tpu.memory_space<vmem>>, vector<1x8x128xf32>
      %65 = vector.shape_cast %64 : vector<1x8x128xf32> to vector<8x128xf32>
      %66 = arith.subf %23, %65 : vector<8x128xf32>
      %cst_38 = arith.constant -1.000000e-01 : f32
      %67 = vector.broadcast %cst_38 : f32 to vector<8x128xf32>
      %68 = arith.mulf %67, %66 : vector<8x128xf32>
      %cst_39 = arith.constant 0.899999976 : f32
      %69 = vector.broadcast %cst_39 : f32 to vector<8x128xf32>
      %70 = arith.mulf %69, %66 : vector<8x128xf32>
      %71 = arith.maximumf %68, %70 : vector<8x128xf32>
      %cst_40 = arith.constant 0.000000e+00 : f32
      %72 = vector.shape_cast %21 : vector<8x1xi1> to vector<8x1xi1>
      %73 = vector.broadcast %72 : vector<8x1xi1> to vector<8x128xi1>
      %74 = vector.broadcast %cst_40 : f32 to vector<8x128xf32>
      %75 = arith.select %73, %71, %74 : vector<8x128xi1>, vector<8x128xf32>
      %c2_41 = arith.constant 2 : index
      %c0_42 = arith.constant 0 : index
      %c0_43 = arith.constant 0 : index
      %76 = vector.load %arg5[%c2_41, %c0_42, %c0_43] : memref<3x8x128xf32, #tpu.memory_space<vmem>>, vector<1x8x128xf32>
      %77 = vector.shape_cast %76 : vector<1x8x128xf32> to vector<8x128xf32>
      %78 = vector.shape_cast %75 : vector<8x128xf32> to vector<1x8x128xf32>
      %cst_44 = arith.constant dense<0.000000e+00> : vector<8x128xf32>
      %79 = vector.multi_reduction <add>, %78, %cst_44 [0] : vector<1x8x128xf32> to vector<8x128xf32>
      %80 = arith.addf %77, %79 : vector<8x128xf32>
      %c2_45 = arith.constant 2 : index
      %c0_46 = arith.constant 0 : index
      %c0_47 = arith.constant 0 : index
      %81 = vector.load %arg5[%c2_45, %c0_46, %c0_47] : memref<3x8x128xf32, #tpu.memory_space<vmem>>, vector<1x8x128xf32>
      %82 = vector.shape_cast %81 : vector<1x8x128xf32> to vector<8x128xf32>
      %83 = vector.shape_cast %80 : vector<8x128xf32> to vector<1x8x128xf32>
      tpu.vector_store %arg5[%c2_45, %c0_46, %c0_47], %83 {strides = array<i32>} : memref<3x8x128xf32, #tpu.memory_space<vmem>>, vector<1x8x128xf32>,
    } else {
    }
    %c0_i32_7 = arith.constant 0 : i32
    %14 = arith.cmpi eq, %arg1, %c0_i32_7 : i32
    %15 = arith.extui %14 : i1 to i32
    %c0_i32_8 = arith.constant 0 : i32
    %16 = arith.cmpi ne, %15, %c0_i32_8 : i32
    scf.if %16 {
      %c0 = arith.constant 0 : index
      %c0_9 = arith.constant 0 : index
      %c0_10 = arith.constant 0 : index
      %17 = vector.load %arg5[%c0, %c0_9, %c0_10] : memref<3x8x128xf32, #tpu.memory_space<vmem>>, vector<3x8x128xf32>
      %cst = arith.constant dense<0.000000e+00> : vector<8x128xf32>
      %18 = vector.multi_reduction <add>, %17, %cst [0] : vector<3x8x128xf32> to vector<8x128xf32>
      %19 = vector.shape_cast %18 : vector<8x128xf32> to vector<1x8x128xf32>
      %c0_11 = arith.constant 0 : index
      %c0_12 = arith.constant 0 : index
      %c0_13 = arith.constant 0 : index
      %20 = vector.load %arg4[%c0_11, %c0_12, %c0_13] : memref<1x8x128xf32, #tpu.memory_space<vmem>>, vector<1x8x128xf32>
      tpu.vector_store %arg4[%c0_11, %c0_12, %c0_13], %19 {strides = array<i32>} : memref<1x8x128xf32, #tpu.memory_space<vmem>>, vector<1x8x128xf32>,
    } else {
    }
    return
  }
  func.func @transform_0(%arg0: i32, %arg1: i32) -> (i32, i32, i32) {
    %c1_i32 = arith.constant 1 : i32
    %0 = arith.muli %arg0, %c1_i32 : i32
    %1 = arith.addi %0, %arg1 : i32
    %c0_i32 = arith.constant 0 : i32
    %2 = arith.minsi %1, %c0_i32 : i32
    %c0_i32_0 = arith.constant 0 : i32
    %c0_i32_1 = arith.constant 0 : i32
    %c0_i32_2 = arith.constant 0 : i32
    return %c0_i32_0, %2, %c0_i32_1 : i32, i32, i32
  }
  func.func @transform_1(%arg0: i32, %arg1: i32) -> (i32, i32, i32) {
    %c1_i32 = arith.constant 1 : i32
    %0 = arith.muli %arg0, %c1_i32 : i32
    %1 = arith.addi %0, %arg1 : i32
    %c0_i32 = arith.constant 0 : i32
    %2 = arith.minsi %1, %c0_i32 : i32
    %c0_i32_0 = arith.constant 0 : i32
    %c0_i32_1 = arith.constant 0 : i32
    %c0_i32_2 = arith.constant 0 : i32
    return %c0_i32_0, %2, %c0_i32_1 : i32, i32, i32
  }
  func.func @transform_2(%arg0: i32, %arg1: i32) -> (i32, i32, i32) {
    %c0_i32 = arith.constant 0 : i32
    %c0_i32_0 = arith.constant 0 : i32
    %c0_i32_1 = arith.constant 0 : i32
    return %arg0, %c0_i32, %c0_i32_0 : i32, i32, i32
  }
}

</mosaic_0001>

<bundles_post_ra>
// kernel: _quantile_loss_impl.1
= control target key start
LH: loop header
LB: loop body
LE: loop exit
PB: predicated region body
PF: predicated region fallthrough
CT: control target
= control target key end

     0   :  { %s216_s0 = inlined_call_operand.vmem [shape: f32[3,8,128], index: 0, kind: input, shape index: {}]   ;;  %s217_s1 = inlined_call_operand.vmem [shape: f32[1,8,128], index: 1, kind: input, shape index: {}]   ;;  %s218_s2 = inlined_call_operand.vmem [shape: f32[1,8,128], index: 2, kind: output, shape index: {}]  }
   0x1   :  { %v79_v0 = vld [vmem:[%s217_s1] sm:$0xff]  ;;  %v182_v2 = vld [vmem:[%s216_s0 + $0x8] sm:$0xff]  ;;  %v183_v5 = vld [vmem:[%s216_s0 + $0x10] sm:$0xff] }
   0x2   :  { %v80_v1 = vld [vmem:[%s216_s0] sm:$0xff]  ;;  %v91_v4 = vsub.f32 %v79_v0, %v182_v2  ;;  %v102_v6 = vsub.f32 %v79_v0, %v183_v5 }
   0x3   :  { %v81_v3 = vsub.f32 %v79_v0, %v80_v1 }
   0x4   :  { %v92_v9 = vmul.f32 -0.5, %v91_v4  ;;  %v93_v10 = vmul.f32 0.5, %v91_v4  ;;  %v103_v11 = vmul.f32 -0.1, %v102_v6  ;;  %v104_v12 = vmul.f32 0.9, %v102_v6 }
   0x5   :  { %v82_v7 = vmul.f32 -0.9, %v81_v3  ;;  %v83_v8 = vmul.f32 0.1, %v81_v3 }
   0x6   :  { %v94_v14 = vmax.f32 %v92_v9, %v93_v10  ;;  %v105_v15 = vmax.f32 %v103_v11, %v104_v12 }
   0x7   :  { %v84_v13 = vmax.f32 %v82_v7, %v83_v8 }
   0x9   :  { %v163_v16 = vadd.f32 %v94_v14, %v84_v13 }
   0xb   :  { %v164_v17 = vadd.f32 %v163_v16, %v105_v15 }
   0xd   :  { %165 = vst [vmem:[%s218_s2] sm:$0xff] %v164_v17 }

</bundles_post_ra>
